<compile_context>
chip_gen: v5e
topology: v5e:2x2
jax: 0.10.0
libtpu: 0.0.40
codegen_flags: <defaults>
</compile_context>

<pallas_src>
import jax
import jax.numpy as jnp
from jax.experimental import pallas as pl
from jax.experimental.pallas import tpu as pltpu


# ----------------------------------------------------------------------------
# Helpers
# ----------------------------------------------------------------------------
def _round_up(n, m):
    return ((n + m - 1) // m) * m


def _pick_tile(dim, preferred=512):
    """Largest of (preferred, 256, 128) that divides `dim` (dim is a 128-multiple)."""
    for t in (preferred, 256, 128):
        if dim % t == 0:
            return t
    return dim


def _tpu_vmem_limit_bytes():
    """Generation-aware scoped-VMEM limit: ~48 MiB on v7x (64 MiB phys),
    ~100 MiB on v5e/v6e (128 MiB phys)."""
    cap = None
    try:
        cap = int(pltpu.get_tpu_info().vmem_capacity_bytes)
    except Exception:
        cap = None
    if cap is None:
        try:
            kind = jax.devices()[0].device_kind.lower()
        except Exception:
            kind = ""
        cap = 64 * 1024 * 1024 if "7" in kind else 128 * 1024 * 1024
    return int(min(cap - 16 * 1024 * 1024, 100 * 1024 * 1024))


def _has_two_tensorcores():
    """Heuristic: v7x exposes 2 TensorCores per chip."""
    try:
        kind = jax.devices()[0].device_kind.lower()
    except Exception:
        return False
    return "7" in kind


# ----------------------------------------------------------------------------
# Kernels
# ----------------------------------------------------------------------------
def linear_relu_kernel(x_ref, w_ref, b_ref, o_ref, acc_ref):
    """One (batch, N) output tile of relu(x @ w + b); grid axis 2 is the K
    reduction (P3 accumulator pattern)."""
    k = pl.program_id(2)

    @pl.when(k == 0)
    def _():
        acc_ref[...] = jnp.zeros_like(acc_ref)

    acc_ref[...] += jnp.dot(x_ref[...], w_ref[...],
                            preferred_element_type=jnp.float32)

    @pl.when(k == pl.num_programs(2) - 1)
    def _():
        o_ref[...] = jnp.maximum(acc_ref[...] + b_ref[...], 0.0).astype(o_ref.dtype)


def head_kernel(h1_ref, w2_ref, b2_ref, w3_ref, b3_ref, o_ref, z_ref):
    """Fused Linear(D,H)+ReLU epilogue with the Linear(H,1)+Sigmoid head.

    Grid axis 1 streams w2 in column chunks; per chunk the h2 slice stays in
    vregs (MXU matmul -> bias -> ReLU -> *w3 -> lane reduce).  The per-row
    partial sums accumulate into a lane-dense (1, bt) scratch.
    """
    h = pl.program_id(1)

    @pl.when(h == 0)
    def _():
        z_ref[...] = jnp.zeros_like(z_ref)

    # Layer 2 chunk: (bt, D) @ (D, tn_h) on the MXU with f32 accumulation.
    h2 = jnp.dot(h1_ref[...], w2_ref[...], preferred_element_type=jnp.float32)
    h2 = jnp.maximum(h2 + b2_ref[...], 0.0)

    # Layer 3 partial: VPU multiply + cross-lane reduce -> lane-dense row.
    z_ref[...] += jnp.sum(h2 * w3_ref[...], axis=1)[None, :]

    @pl.when(h == pl.num_programs(1) - 1)
    def _():
        z = z_ref[...] + b3_ref[...]
        o_ref[...] = (1.0 / (1.0 + jnp.exp(-z))).astype(o_ref.dtype)


# ----------------------------------------------------------------------------
# Wrapper
# ----------------------------------------------------------------------------
def prepare_params(params):
    """One-time pad + bf16 cast of the weights (hoisted out of the forward path).

    params: dict of w1,b1,w2,b2,w3,b3 in f32 with weights in (in, out) layout.
    """
    D = params["w1"].shape[0]
    H = params["w2"].shape[1]
    Dp = _round_up(D, 128)

    def pad2(a, rows, cols, dtype):
        a = a.astype(dtype)
        if a.shape == (rows, cols):
            return a
        return jnp.zeros((rows, cols), dtype).at[:a.shape[0], :a.shape[1]].set(a)

    return {
        "w1": pad2(params["w1"], Dp, Dp, jnp.bfloat16),
        "b1": pad2(params["b1"].reshape(1, -1), 1, Dp, jnp.float32),
        "w2": pad2(params["w2"], Dp, H, jnp.bfloat16),
        "b2": params["b2"].reshape(1, H).astype(jnp.float32),
        "w3": params["w3"].reshape(1, H).astype(jnp.float32),
        "b3": params["b3"].reshape(1, 1).astype(jnp.float32),
        "d_in": D,
    }


def encoder_forward(x, prepared):
    """x: (B, D) float32.  prepared: output of prepare_params()."""
    B, D = x.shape
    assert D == prepared["d_in"]
    Dp = prepared["w1"].shape[0]
    H = prepared["w2"].shape[1]

    vmem_limit = _tpu_vmem_limit_bytes()
    two_core = _has_two_tensorcores()

    # Batch tile: multiple of 16 (bf16 sublane packing), capped at 256 (MXU M).
    # On 2-TC chips, a single >=256-row tile would leave one core idle.
    if B >= 256:
        bt = 256
        if two_core and _round_up(B, bt) // bt < 2:
            bt = 128
    else:
        bt = _round_up(B, 16)
    Bp = _round_up(B, bt)

    # Per-call activation pad/cast (weights were prepared once, outside).
    xb = x.astype(jnp.bfloat16)
    if (B, D) != (Bp, Dp):
        xb = jnp.zeros((Bp, Dp), jnp.bfloat16).at[:B, :D].set(xb)

    # ---------------- Layer 1: h1 = relu(x @ w1 + b1), K/N tiled ----------------
    t1 = _pick_tile(Dp, 512)
    grid1 = (Bp // bt, Dp // t1, Dp // t1)
    cost1 = pl.CostEstimate(
        flops=2 * Bp * Dp * Dp,
        transcendentals=0,
        bytes_accessed=Bp * Dp * 2 + Dp * Dp * 2 + Dp * 4 + Bp * Dp * 2,
    )
    h1 = pl.pallas_call(
        linear_relu_kernel,
        out_shape=jax.ShapeDtypeStruct((Bp, Dp), jnp.bfloat16),
        grid_spec=pltpu.PrefetchScalarGridSpec(
            num_scalar_prefetch=0,
            grid=grid1,
            in_specs=[
                pl.BlockSpec((bt, t1), lambda b, n, k: (b, k)),   # x tile
                pl.BlockSpec((t1, t1), lambda b, n, k: (k, n)),   # w1 tile (bf16)
                pl.BlockSpec((1, t1), lambda b, n, k: (0, n)),    # b1 slice (f32)
            ],
            out_specs=pl.BlockSpec((bt, t1), lambda b, n, k: (b, n)),
            scratch_shapes=[pltpu.VMEM((bt, t1), jnp.float32)],
        ),
        compiler_params=pltpu.CompilerParams(
            dimension_semantics=("parallel", "parallel", "arbitrary"),
            vmem_limit_bytes=vmem_limit,
        ),
        cost_estimate=cost1,
    )(xb, prepared["w1"], prepared["b1"])

    # -------- Layers 2+3 fused: z = sigmoid(relu(h1 @ w2 + b2) @ w3 + b3) --------
    tn_h = _pick_tile(H, 512)
    # Keep the streamed (Dp, tn_h) w2 block within ~8 MiB for very large D.
    while tn_h > 128 and Dp * tn_h * 2 > (8 << 20) and H % (tn_h // 2) == 0:
        tn_h //= 2
    grid2 = (Bp // bt, H // tn_h)
    cost2 = pl.CostEstimate(
        flops=2 * Bp * Dp * H + 2 * Bp * H,
        transcendentals=Bp,
        bytes_accessed=Bp * Dp * 2 + Dp * H * 2 + H * 8 + Bp * 4 + 4,
    )
    zrow = pl.pallas_call(
        head_kernel,
        out_shape=jax.ShapeDtypeStruct((1, Bp), jnp.float32),   # lane-dense output
        grid_spec=pltpu.PrefetchScalarGridSpec(
            num_scalar_prefetch=0,
            grid=grid2,
            in_specs=[
                pl.BlockSpec((bt, Dp), lambda b, h: (b, 0)),     # h1 batch tile (bf16)
                pl.BlockSpec((Dp, tn_h), lambda b, h: (0, h)),   # w2 column chunk (bf16)
                pl.BlockSpec((1, tn_h), lambda b, h: (0, h)),    # b2 chunk (f32)
                pl.BlockSpec((1, tn_h), lambda b, h: (0, h)),    # w3 chunk (f32)
                pl.BlockSpec((1, 1), lambda b, h: (0, 0)),       # b3 (f32)
            ],
            out_specs=pl.BlockSpec((1, bt), lambda b, h: (0, b)),
            scratch_shapes=[pltpu.VMEM((1, bt), jnp.float32)],
        ),
        compiler_params=pltpu.CompilerParams(
            dimension_semantics=("parallel", "arbitrary"),
            vmem_limit_bytes=vmem_limit,
        ),
        cost_estimate=cost2,
    )(h1, prepared["w2"], prepared["b2"], prepared["w3"], prepared["b3"])

    return zrow[0, :B].reshape(B, 1)


def init_params(key, D, H, O):
    """PyTorch nn.Linear default init: U[-k, k], k = 1/sqrt(fan_in)."""
    ks = jax.random.split(key, 6)

    def lin(kw, kb, fan_in, fan_out):
        k = 1.0 / jnp.sqrt(fan_in)
        w = jax.random.uniform(kw, (fan_in, fan_out), jnp.float32, -k, k)
        b = jax.random.uniform(kb, (fan_out,), jnp.float32, -k, k)
        return w, b

    w1, b1 = lin(ks[0], ks[1], D, D)
    w2, b2 = lin(ks[2], ks[3], D, H)
    w3, b3 = lin(ks[4], ks[5], H, O)
    return {"w1": w1, "b1": b1, "w2": w2, "b2": b2, "w3": w3, "b3": b3}


if __name__ == "__main__":
    # Small shapes consistent with the module: D is data-dependent (X_tr.shape[1]);
    # the module fixes layers = [D, 4096, 1].
    B, D, H, O = 16, 256, 4096, 1

    key = jax.random.PRNGKey(0)
    kx, kp = jax.random.split(key)
    x = jax.random.normal(kx, (B, D), jnp.float32)
    params = init_params(kp, D, H, O)

    prepared = prepare_params(params)          # one-time weight pad + bf16 cast
    out = encoder_forward(x, prepared)
    out = jax.block_until_ready(out)

    # Pure-JAX reference with the same bf16 casts at the matmul boundaries so
    # the comparison is apples-to-apples with the bf16-streaming kernel.
    xb = x.astype(jnp.bfloat16).astype(jnp.float32)
    w1f = params["w1"].astype(jnp.bfloat16).astype(jnp.float32)
    w2f = params["w2"].astype(jnp.bfloat16).astype(jnp.float32)
    h1 = jnp.maximum(xb @ w1f + params["b1"], 0.0)
    h1 = h1.astype(jnp.bfloat16).astype(jnp.float32)
    h2 = jnp.maximum(h1 @ w2f + params["b2"], 0.0)
    ref = jax.nn.sigmoid(h2 @ params["w3"] + params["b3"])

    assert out.shape == (B, O)
    assert jnp.max(jnp.abs(out - ref)) < 2e-3

    print("KERNEL_OK")
</pallas_src>

<mosaic_0001>
module attributes {stable_mosaic.version = 11 : i64} {
  func.func @linear_relu_kernel(%arg0: i32, %arg1: i32, %arg2: i32, %arg3: memref<16x256xbf16, #tpu.memory_space<vmem>>, %arg4: memref<256x256xbf16, #tpu.memory_space<vmem>>, %arg5: memref<1x256xf32, #tpu.memory_space<vmem>>, %arg6: memref<16x256xbf16, #tpu.memory_space<vmem>>, %arg7: memref<16x256xf32, #tpu.memory_space<vmem>>) attributes {dimension_semantics = [#tpu.dimension_semantics<parallel>, #tpu.dimension_semantics<parallel>, #tpu.dimension_semantics<arbitrary>], iteration_bounds = array<i64: 1, 1, 1>, scalar_prefetch = 0 : i64, scratch_operands = 1 : i64, tpu.core_type = #tpu.core_type<tc>, window_params = [{transform_indices = @transform_0, window_bounds = array<i64: 16, 256>}, {transform_indices = @transform_1, window_bounds = array<i64: 256, 256>}, {transform_indices = @transform_2, window_bounds = array<i64: 1, 256>}, {transform_indices = @transform_3, window_bounds = array<i64: 16, 256>}]} {
    %c0_i32 = arith.constant 0 : i32
    %0 = arith.cmpi eq, %arg2, %c0_i32 : i32
    %1 = arith.extui %0 : i1 to i32
    %c0_i32_0 = arith.constant 0 : i32
    %2 = arith.cmpi ne, %1, %c0_i32_0 : i32
    scf.if %2 {
      %cst_10 = arith.constant 0.000000e+00 : f32
      %12 = vector.broadcast %cst_10 : f32 to vector<16x256xf32>
      %c0_11 = arith.constant 0 : index
      %c0_12 = arith.constant 0 : index
      %13 = vector.load %arg7[%c0_11, %c0_12] : memref<16x256xf32, #tpu.memory_space<vmem>>, vector<16x256xf32>
      tpu.vector_store %arg7[%c0_11, %c0_12], %12 {strides = array<i32>} : memref<16x256xf32, #tpu.memory_space<vmem>>, vector<16x256xf32>,
    } else {
    }
    %c0 = arith.constant 0 : index
    %c0_1 = arith.constant 0 : index
    %3 = vector.load %arg7[%c0, %c0_1] : memref<16x256xf32, #tpu.memory_space<vmem>>, vector<16x256xf32>
    %c0_2 = arith.constant 0 : index
    %c0_3 = arith.constant 0 : index
    %4 = vector.load %arg3[%c0_2, %c0_3] : memref<16x256xbf16, #tpu.memory_space<vmem>>, vector<16x256xbf16>
    %c0_4 = arith.constant 0 : index
    %c0_5 = arith.constant 0 : index
    %5 = vector.load %arg4[%c0_4, %c0_5] : memref<256x256xbf16, #tpu.memory_space<vmem>>, vector<256x256xbf16>
    %cst = arith.constant dense<0.000000e+00> : vector<16x256xf32>
    %6 = tpu.matmul %4, %5, %cst {dimension_numbers = #tpu.dot_dimension_numbers<[1], [0], [0], [1], [0, 0, 1, 1], [], []>} : vector<16x256xbf16>, vector<256x256xbf16>, vector<16x256xf32> -> vector<16x256xf32>
    %7 = arith.addf %3, %6 : vector<16x256xf32>
    %c0_6 = arith.constant 0 : index
    %c0_7 = arith.constant 0 : index
    %8 = vector.load %arg7[%c0_6, %c0_7] : memref<16x256xf32, #tpu.memory_space<vmem>>, vector<16x256xf32>
    tpu.vector_store %arg7[%c0_6, %c0_7], %7 {strides = array<i32>} : memref<16x256xf32, #tpu.memory_space<vmem>>, vector<16x256xf32>,
    %c0_i32_8 = arith.constant 0 : i32
    %9 = arith.cmpi eq, %arg2, %c0_i32_8 : i32
    %10 = arith.extui %9 : i1 to i32
    %c0_i32_9 = arith.constant 0 : i32
    %11 = arith.cmpi ne, %10, %c0_i32_9 : i32
    scf.if %11 {
      %c0_10 = arith.constant 0 : index
      %c0_11 = arith.constant 0 : index
      %12 = vector.load %arg7[%c0_10, %c0_11] : memref<16x256xf32, #tpu.memory_space<vmem>>, vector<16x256xf32>
      %c0_12 = arith.constant 0 : index
      %c0_13 = arith.constant 0 : index
      %13 = vector.load %arg5[%c0_12, %c0_13] : memref<1x256xf32, #tpu.memory_space<vmem>>, vector<1x256xf32>
      %14 = vector.broadcast %13 : vector<1x256xf32> to vector<16x256xf32>
      %15 = arith.addf %12, %14 : vector<16x256xf32>
      %cst_14 = arith.constant 0.000000e+00 : f32
      %16 = vector.broadcast %cst_14 : f32 to vector<16x256xf32>
      %17 = arith.maximumf %15, %16 : vector<16x256xf32>
      %18 = arith.truncf %17 : vector<16x256xf32> to vector<16x256xbf16>
      %c0_15 = arith.constant 0 : index
      %c0_16 = arith.constant 0 : index
      %19 = vector.load %arg6[%c0_15, %c0_16] : memref<16x256xbf16, #tpu.memory_space<vmem>>, vector<16x256xbf16>
      tpu.vector_store %arg6[%c0_15, %c0_16], %18 {strides = array<i32>} : memref<16x256xbf16, #tpu.memory_space<vmem>>, vector<16x256xbf16>,
    } else {
    }
    return
  }
  func.func @transform_0(%arg0: i32, %arg1: i32, %arg2: i32) -> (i32, i32) {
    %c0_i32 = arith.constant 0 : i32
    return %arg0, %arg2 : i32, i32
  }
  func.func @transform_1(%arg0: i32, %arg1: i32, %arg2: i32) -> (i32, i32) {
    %c0_i32 = arith.constant 0 : i32
    return %arg2, %arg1 : i32, i32
  }
  func.func @transform_2(%arg0: i32, %arg1: i32, %arg2: i32) -> (i32, i32) {
    %c0_i32 = arith.constant 0 : i32
    %c0_i32_0 = arith.constant 0 : i32
    return %c0_i32, %arg1 : i32, i32
  }
  func.func @transform_3(%arg0: i32, %arg1: i32, %arg2: i32) -> (i32, i32) {
    %c0_i32 = arith.constant 0 : i32
    return %arg0, %arg1 : i32, i32
  }
}

</mosaic_0001>

<bundles_post_ra>
// kernel: tpu_custom_call.1
= control target key start
LH: loop header
LB: loop body
LE: loop exit
PB: predicated region body
PF: predicated region fallthrough
CT: control target
= control target key end

     0   :  { %8 = vsyncpa [#allocation4], 0  ;;  %s710_s0 = inlined_call_operand.hbm [shape: bf16[16,256], index: 0, kind: input, shape index: {}]   ;;  %s711_s1 = inlined_call_operand.hbm [shape: bf16[256,256], index: 1, kind: input, shape index: {}]   ;;  %s712_s2 = inlined_call_operand.hbm [shape: f32[1,256], index: 2, kind: input, shape index: {}]   ;;  %s713_s3 = inlined_call_operand.hbm [shape: bf16[16,256], index: 3, kind: output, shape index: {}]  }
   0x1   :  { %9 = vsyncpa [#allocation7], 0 }
   0x2   :  { %10 = vsyncpa [#allocation5], 0  ;;  %s28_s14 = sshll.u32 %s711_s1, 4  ;;  %s663_s15 = smov [#allocation6]   ;;  %s29_s14 = int_to_ptr.hbm [resolvable:$true] %s28_s14 }
   0x3   :  { %s30_s16 = sshll.u32 %s663_s15, 4  ;;  %s15_s19 = sshll.u32 %s710_s0, 4  ;;  %s31_s16 = int_to_ptr.vmem [resolvable:$true] %s30_s16  ;;  %s16_s19 = int_to_ptr.hbm [resolvable:$true] %s15_s19 }
   0x4   :  { %s664_s20 = smov 128   ;;  %s665_s21 = smov 8  }
   0x5   :  { %36 = dma.hbm_to_vmem [thread:$0]  %s29_s14, 4096, %s31_s16, [#allocation7], %s664_s20, %s664_s20, %s665_s21  }
   0x6   :  { %s666_s22 = smov [#allocation3]   ;;  %s42_s1 = sshll.u32 %s712_s2, 4  ;;  %s43_s1 = int_to_ptr.hbm [resolvable:$true] %s42_s1 }
   0x7   :  { %s17_s23 = sshll.u32 %s666_s22, 4  ;;  %s667_s0 = smov [#allocation8]   ;;  %s18_s23 = int_to_ptr.vmem [resolvable:$true] %s17_s23 }
   0x8   :  { %23 = dma.hbm_to_vmem [thread:$0]  %s16_s19, 256, %s18_s23, [#allocation4], %s664_s20, %s664_s20, %s665_s21  }
   0x9   :  { %s44_s26 = sshll.u32 %s667_s0, 4  ;;  %s45_s26 = int_to_ptr.vmem [resolvable:$true] %s44_s26 }
   0xa   :  { %47 = dma.hbm_to_vmem [thread:$0]  %s43_s1, 32, %s45_s26, [#allocation7]  }
   0xb   :  { %657 = dma.done.wait [#allocation4], 256  }
   0xc   :  { %658 = vsyncadd [#allocation4], 4294967040 }
   0xd   :  { %659 = dma.done.wait [#allocation7], 4128  }
   0xe   :  { %660 = vsyncadd [#allocation7], 4294963168  ;;  %v451_v0 = vld [vmem:[#allocation6 + $0x70] sm:$0xf]  ;;  %v538_v1 = vld [vmem:[#allocation6 + $0x74] sm:$0xf0] }
   0xf   :  { %v515_v2 = vld [vmem:[#allocation6 + $0xf0] sm:$0xf]  ;;  %v452_v3 = vor.u32 %v538_v1, %v451_v0  ;;  %v554_v4 = vld [vmem:[#allocation6 + $0xf4] sm:$0xf0]  ;;  %v537_v5 = vld [vmem:[#allocation6 + $0x74] sm:$0xf] }
  0x10   :  { %v453_v6 = vld [vmem:[#allocation6 + $0x78] sm:$0xf0]  ;;  %v516_v7 = vor.u32 %v554_v4, %v515_v2  ;;  %v553_v9 = vld [vmem:[#allocation6 + $0xf4] sm:$0xf]  ;;  %v443_v11 = vld [vmem:[#allocation6 + $0x60] sm:$0xf] }
  0x11   :  { %v456_v8 = vor.u32 %v537_v5, %v453_v6  ;;  %v517_v10 = vld [vmem:[#allocation6 + $0xf8] sm:$0xf0]  ;;  %276 = vmatpush.bf16.msra.mxu0 %v452_v3  ;;  %v536_v13 = vld [vmem:[#allocation6 + $0x64] sm:$0xf0]  ;;  %v507_v14 = vld [vmem:[#allocation6 + $0xe0] sm:$0xf] }
  0x12   :  { %v520_v12 = vor.u32 %v553_v9, %v517_v10  ;;  %v552_v15 = vld [vmem:[#allocation6 + $0xe4] sm:$0xf0]  ;;  %290 = vmatpush.bf16.msra.mxu1 %v516_v7  ;;  %v444_v16 = vor.u32 %v536_v13, %v443_v11  ;;  %v535_v18 = vld [vmem:[#allocation6 + $0x64] sm:$0xf]  ;;  %v445_v19 = vld [vmem:[#allocation6 + $0x68] sm:$0xf0] }
  0x13   :  { %304 = vmatpush.bf16.msra.mxu2 %v456_v8  ;;  %v508_v17 = vor.u32 %v552_v15, %v507_v14  ;;  %v551_v20 = vld [vmem:[#allocation6 + $0xe4] sm:$0xf]  ;;  %v448_v21 = vor.u32 %v535_v18, %v445_v19  ;;  %v509_v22 = vld [vmem:[#allocation6 + $0xe8] sm:$0xf0]  ;;  %v435_v23 = vld [vmem:[#allocation6 + $0x50] sm:$0xf] }
  0x14   :  { %318 = vmatpush.bf16.msra.mxu3 %v520_v12  ;;  %v534_v24 = vld [vmem:[#allocation6 + $0x54] sm:$0xf0]  ;;  %v512_v25 = vor.u32 %v551_v20, %v509_v22  ;;  %v499_v26 = vld [vmem:[#allocation6 + $0xd0] sm:$0xf]  ;;  %v533_v28 = vld [vmem:[#allocation6 + $0x54] sm:$0xf] }
  0x15   :  { %v550_v27 = vld [vmem:[#allocation6 + $0xd4] sm:$0xf0]  ;;  %277 = vmatpush.bf16.msra.mxu0 %v444_v16  ;;  %v436_v29 = vor.u32 %v534_v24, %v435_v23  ;;  %v437_v30 = vld [vmem:[#allocation6 + $0x58] sm:$0xf0]  ;;  %v549_v31 = vld [vmem:[#allocation6 + $0xd4] sm:$0xf] }
  0x16   :  { %v501_v32 = vld [vmem:[#allocation6 + $0xd8] sm:$0xf0]  ;;  %291 = vmatpush.bf16.msra.mxu1 %v508_v17  ;;  %v500_v33 = vor.u32 %v550_v27, %v499_v26  ;;  %v440_v34 = vor.u32 %v533_v28, %v437_v30  ;;  %v427_v35 = vld [vmem:[#allocation6 + $0x40] sm:$0xf]  ;;  %v532_v36 = vld [vmem:[#allocation6 + $0x44] sm:$0xf0] }
  0x17   :  { %305 = vmatpush.bf16.msra.mxu2 %v448_v21  ;;  %v491_v37 = vld [vmem:[#allocation6 + $0xc0] sm:$0xf]  ;;  %v504_v38 = vor.u32 %v549_v31, %v501_v32  ;;  %v548_v39 = vld [vmem:[#allocation6 + $0xc4] sm:$0xf0]  ;;  %v531_v40 = vld [vmem:[#allocation6 + $0x44] sm:$0xf]  ;;  %v428_v44 = vor.u32 %v532_v36, %v427_v35 }
  0x18   :  { %319 = vmatpush.bf16.msra.mxu3 %v512_v25  ;;  %v429_v41 = vld [vmem:[#allocation6 + $0x48] sm:$0xf0]  ;;  %v547_v42 = vld [vmem:[#allocation6 + $0xc4] sm:$0xf]  ;;  %v492_v45 = vor.u32 %v548_v39, %v491_v37  ;;  %v419_v47 = vld [vmem:[#allocation6 + $0x30] sm:$0xf] }
  0x19   :  { %v493_v43 = vld [vmem:[#allocation6 + $0xc8] sm:$0xf0]  ;;  %278 = vmatpush.bf16.msra.mxu0 %v436_v29  ;;  %v432_v46 = vor.u32 %v531_v40, %v429_v41  ;;  %v530_v48 = vld [vmem:[#allocation6 + $0x34] sm:$0xf0]  ;;  %v483_v49 = vld [vmem:[#allocation6 + $0xb0] sm:$0xf] }
  0x1a   :  { %292 = vmatpush.bf16.msra.mxu1 %v500_v33  ;;  %v496_v50 = vor.u32 %v547_v42, %v493_v43  ;;  %v546_v51 = vld [vmem:[#allocation6 + $0xb4] sm:$0xf0]  ;;  %v529_v52 = vld [vmem:[#allocation6 + $0x34] sm:$0xf]  ;;  %v421_v53 = vld [vmem:[#allocation6 + $0x38] sm:$0xf0]  ;;  %v420_v56 = vor.u32 %v530_v48, %v419_v47 }
  0x1b   :  { %306 = vmatpush.bf16.msra.mxu2 %v440_v34  ;;  %v545_v54 = vld [vmem:[#allocation6 + $0xb4] sm:$0xf]  ;;  %v485_v55 = vld [vmem:[#allocation6 + $0xb8] sm:$0xf0]  ;;  %v484_v57 = vor.u32 %v546_v51, %v483_v49  ;;  %v424_v58 = vor.u32 %v529_v52, %v421_v53  ;;  %v411_v59 = vld [vmem:[#allocation6 + $0x20] sm:$0xf] }
  0x1c   :  { %320 = vmatpush.bf16.msra.mxu3 %v504_v38  ;;  %v528_v60 = vld [vmem:[#allocation6 + $0x24] sm:$0xf0]  ;;  %v475_v61 = vld [vmem:[#allocation6 + $0xa0] sm:$0xf]  ;;  %v488_v62 = vor.u32 %v545_v54, %v485_v55  ;;  %v527_v0 = vld [vmem:[#allocation6 + $0x24] sm:$0xf] }
  0x1d   :  { %279 = vmatpush.bf16.msra.mxu0 %v428_v44  ;;  %v544_v63 = vld [vmem:[#allocation6 + $0xa4] sm:$0xf0]  ;;  %v413_v1 = vld [vmem:[#allocation6 + $0x28] sm:$0xf0]  ;;  %v543_v2 = vld [vmem:[#allocation6 + $0xa4] sm:$0xf]  ;;  %v412_v4 = vor.u32 %v528_v60, %v411_v59 }
  0x1e   :  { %293 = vmatpush.bf16.msra.mxu1 %v492_v45  ;;  %v477_v3 = vld [vmem:[#allocation6 + $0xa8] sm:$0xf0]  ;;  %v476_v5 = vor.u32 %v544_v63, %v475_v61  ;;  %v416_v6 = vor.u32 %v527_v0, %v413_v1  ;;  %v403_v7 = vld [vmem:[#allocation6 + $0x10] sm:$0xf]  ;;  %v526_v8 = vld [vmem:[#allocation6 + $0x14] sm:$0xf0] }
  0x1f   :  { %307 = vmatpush.bf16.msra.mxu2 %v432_v46  ;;  %v467_v9 = vld [vmem:[#allocation6 + $0x90] sm:$0xf]  ;;  %v480_v10 = vor.u32 %v543_v2, %v477_v3  ;;  %v542_v11 = vld [vmem:[#allocation6 + $0x94] sm:$0xf0]  ;;  %v525_v12 = vld [vmem:[#allocation6 + $0x14] sm:$0xf]  ;;  %v404_v16 = vor.u32 %v526_v8, %v403_v7 }
  0x20   :  { %321 = vmatpush.bf16.msra.mxu3 %v496_v50  ;;  %v405_v13 = vld [vmem:[#allocation6 + $0x18] sm:$0xf0]  ;;  %v541_v14 = vld [vmem:[#allocation6 + $0x94] sm:$0xf]  ;;  %v468_v17 = vor.u32 %v542_v11, %v467_v9  ;;  %v395_v19 = vld [vmem:[#allocation6] sm:$0xf] }
  0x21   :  { %280 = vmatpush.bf16.msra.mxu0 %v420_v56  ;;  %v469_v15 = vld [vmem:[#allocation6 + $0x98] sm:$0xf0]  ;;  %v408_v18 = vor.u32 %v525_v12, %v405_v13  ;;  %v524_v20 = vld [vmem:[#allocation6 + $0x4] sm:$0xf0]  ;;  %v459_v21 = vld [vmem:[#allocation6 + $0x80] sm:$0xf] }
  0x22   :  { %294 = vmatpush.bf16.msra.mxu1 %v484_v57  ;;  %v472_v22 = vor.u32 %v541_v14, %v469_v15  ;;  %v540_v23 = vld [vmem:[#allocation6 + $0x84] sm:$0xf0]  ;;  %v523_v24 = vld [vmem:[#allocation6 + $0x4] sm:$0xf]  ;;  %v397_v25 = vld [vmem:[#allocation6 + $0x8] sm:$0xf0]  ;;  %v396_v28 = vor.u32 %v524_v20, %v395_v19 }
  0x23   :  { %308 = vmatpush.bf16.msra.mxu2 %v424_v58  ;;  %v539_v26 = vld [vmem:[#allocation6 + $0x84] sm:$0xf]  ;;  %v461_v27 = vld [vmem:[#allocation6 + $0x88] sm:$0xf0]  ;;  %v387_v29 = vld [vmem:[#allocation3] sm:$0xf]  ;;  %v460_v31 = vor.u32 %v540_v23, %v459_v21  ;;  %v400_v32 = vor.u32 %v523_v24, %v397_v25 }
  0x24   :  { %322 = vmatpush.bf16.msra.mxu3 %v488_v62  ;;  %v522_v30 = vld [vmem:[#allocation3 + $0x4] sm:$0xf0]  ;;  %v521_v33 = vld [vmem:[#allocation3 + $0x4] sm:$0xf]  ;;  %v389_v34 = vld [vmem:[#allocation3 + $0x8] sm:$0xf0]  ;;  %v464_v35 = vor.u32 %v539_v26, %v461_v27 }
  0x25   :  { %281 = vmatpush.bf16.msra.mxu0 %v412_v4  ;;  %v388_v36 = vor.u32 %v522_v30, %v387_v29  ;;  %v392_v37 = vor.u32 %v521_v33, %v389_v34  ;;  %v347_v39 = vld [vmem:[#allocation8] sm:$0x3]  ;;  %s668_s2 = smov [#allocation9]   ;;  %s371_s30 = sshll.u32 %s713_s3, 4  ;;  %s372_s30 = int_to_ptr.hbm [resolvable:$true] %s371_s30 }
  0x26   :  { %295 = vmatpush.bf16.msra.mxu1 %v476_v5  ;;  %v349_v42 = vperm.slane %v347_v39, 0  ;;  %v350_v45 = vperm.slane %v347_v39, 1  ;;  %s369_s27 = sshll.u32 %s668_s2, 4  ;;  %s370_s27 = int_to_ptr.vmem [resolvable:$true] %s369_s27 }
  0x27   :  { %309 = vmatpush.bf16.msra.mxu2 %v416_v6 }
  0x28   :  { %323 = vmatpush.bf16.msra.mxu3 %v480_v10 }
  0x29   :  { %282 = vmatpush.bf16.msra.mxu0 %v404_v16 }
  0x2a   :  { %296 = vmatpush.bf16.msra.mxu1 %v468_v17 }
  0x2b   :  { %310 = vmatpush.bf16.msra.mxu2 %v408_v18 }
  0x2c   :  { %324 = vmatpush.bf16.msra.mxu3 %v472_v22 }
  0x2d   :  { %283 = vmatpush.bf16.msra.mxu0 %v396_v28 }
  0x2e   :  { %297 = vmatpush.bf16.msra.mxu1 %v460_v31 }
  0x2f   :  { %311 = vmatpush.bf16.msra.mxu2 %v400_v32 }
  0x30   :  { %325 = vmatpush.bf16.msra.mxu3 %v464_v35  ;;  %284 = vmatmul.bf16.vlgmr.msra.gmra.mxu0 %v388_v36 }
  0x31   :  { %298 = vmatmul.bf16.vlgmr.msra.gmra.mxu1 %v392_v37 }
  0x32   :  { %312 = vmatmul.bf16.vlgmr.msra.gmra.mxu2 %v388_v36 }
  0x33   :  { %326 = vmatmul.bf16.vlgmr.msra.gmra.mxu3 %v392_v37 }
  0xad   :  { %v285_v38 = vpop.f32.mrf.mxu0 }
  0xae   :  { %v299_v40 = vpop.f32.mrf.mxu1 }
  0xaf   :  { %v300_v41 = vadd.f32 %v299_v40, %v285_v38 }
  0xb1   :  { %v353_v43 = vadd.f32 %v349_v42, %v300_v41 }
  0xb3   :  { %v357_v50 = vmax.f32 %v353_v43, 0.0 }
  0xb5   :  { %v313_v44 = vpop.f32.mrf.mxu2  ;;  %v287_v48 = vpop.f32.mrf.mxu0 }
  0xb6   :  { %v327_v46 = vpop.f32.mrf.mxu3  ;;  %v301_v49 = vpop.f32.mrf.mxu1 }
  0xb7   :  { %v328_v47 = vadd.f32 %v327_v46, %v313_v44  ;;  %v302_v53 = vadd.f32 %v301_v49, %v287_v48 }
  0xb9   :  { %v354_v51 = vadd.f32 %v350_v45, %v328_v47  ;;  %v355_v57 = vadd.f32 %v349_v42, %v302_v53 }
  0xbb   :  { %v358_v52 = vmax.f32 %v354_v51, 0.0  ;;  %v359_v60 = vmax.f32 %v355_v57, 0.0 }
  0xbd   :  { %v361_v54 = vpack.c.bf16 %v358_v52, %v357_v50  ;;  %v315_v55 = vpop.f32.mrf.mxu2 }
  0xbe   :  { %v329_v56 = vpop.f32.mrf.mxu3 }
  0xbf   :  { %363 = vst [vmem:[#allocation9] sm:$0xff] %v361_v54  ;;  %v330_v58 = vadd.f32 %v329_v56, %v315_v55 }
  0xc1   :  { %v356_v59 = vadd.f32 %v350_v45, %v330_v58 }
  0xc3   :  { %v360_v61 = vmax.f32 %v356_v59, 0.0 }
  0xc5   :  { %v362_v62 = vpack.c.bf16 %v360_v61, %v359_v60 }
  0xc7   :  { %364 = vst [vmem:[#allocation9 + $0x8] sm:$0xff] %v362_v62 }
  0xc8   :  { %377 = dma.vmem_to_hbm [thread:$0]  %s370_s27, 256, %s372_s30, [#allocation5], %s664_s20, %s664_s20, %s665_s21  }
  0xc9   :  { %661 = dma.done.wait [#allocation5], 256  }
  0xca   :  { %662 = vsyncadd [#allocation5], 4294967040 }
  0xcb   :  { %382 = vsyncpa [#allocation4], 1 }
  0xcc   :  { %383 = vsyncpa [#allocation7], 1 }
  0xcd   :  { %384 = vsyncpa [#allocation5], 1 }

</bundles_post_ra>
